<compile_context>
chip_gen: v7x
topology: tpu7x:2x2x1
jax: 0.10.0
libtpu: 0.0.40
codegen_flags: <defaults>
</compile_context>

<pallas_src>
import jax
import jax.numpy as jnp
from jax.experimental import pallas as pl
from jax.experimental.pallas import tpu as pltpu


# ---------------------------------------------------------------------------
# Kernel body
# ---------------------------------------------------------------------------
def _temporal_loss_kernel(x_ref, fx1_ref, cm_ref, out_ref):
    # x_ref, fx1_ref : (1, 3, TILE_H, W) blocks (only channels 0..2 were DMA'd)
    # cm_ref         : (1, TILE_H, W)
    # out_ref        : (1, 1, 1, 1) per-(batch, h-tile) partial sum, f32
    cm = cm_ref[0].astype(jnp.float32)                        # (TILE_H, W)
    total = jnp.float32(0.0)
    for ch in range(3):                                       # scalar running sum per channel
        d = x_ref[0, ch].astype(jnp.float32) - fx1_ref[0, ch].astype(jnp.float32)
        total = total + jnp.sum(cm * (d * d))
    out_ref[...] = jnp.reshape(total, (1, 1, 1, 1))


# ---------------------------------------------------------------------------
# Tiling / VMEM heuristics
# ---------------------------------------------------------------------------
def _vmem_capacity_bytes():
    """Physical VMEM of the current generation (conservative 64 MiB fallback)."""
    try:
        info = pltpu.get_tpu_info()
        cap = getattr(info, "vmem_capacity_bytes", None)
        if cap:
            return int(cap)
    except Exception:
        pass
    return 64 << 20  # v7x per-TC capacity — safe lower bound


def _working_set_bytes(tile_h, w, in_itemsize, cm_itemsize):
    """Double-buffered DMA blocks + in-kernel f32 temporaries for one grid step."""
    x_block = 3 * tile_h * w * in_itemsize
    cm_block = tile_h * w * cm_itemsize
    # 2 big inputs x 2 buffers, cm x 2 buffers, ~4 transient f32 (tile_h, W) slabs
    # (cm upcast, per-channel upcasts / diff / square) that the body materializes.
    return 2 * (2 * x_block) + 2 * cm_block + 4 * tile_h * w * 4


def _choose_h_tiling(n, h, w, in_itemsize, cm_itemsize, sublane,
                     target_block_bytes, vmem_budget):
    """Return (padded_h, tile_h)."""

    def ws(th):
        return _working_set_bytes(th, w, in_itemsize, cm_itemsize)

    # 1) Whole-image block per batch whenever the VMEM budget allows.
    if ws(h) <= vmem_budget:
        return h, h

    def pick_from(hh):
        cands = [th for th in range(sublane, hh + 1, sublane) if hh % th == 0]
        if not cands:
            return None
        cands.sort(reverse=True)                 # largest first
        good = [th for th in cands
                if 3 * th * w * in_itemsize <= target_block_bytes
                and ws(th) <= vmem_budget]
        pool = good if good else [cands[-1]]     # smallest aligned divisor fallback
        best = pool[0]
        # v7x megacore heuristic: prefer an even total step count when nearly free.
        steps = n * (hh // best)
        if steps > 1 and steps % 2 == 1:
            for th in pool:
                if (th < best and 2 * th >= best
                        and (n * (hh // th)) % 2 == 0
                        and 3 * th * w * in_itemsize >= (1 << 20)):
                    best = th
                    break
        return best

    th = pick_from(h)
    if th is not None:
        return h, th

    # 2) No sublane-aligned divisor of H (e.g. prime H) and whole-H does not fit:
    #    zero-pad H to a sublane multiple; zero cm padding contributes 0 to the sum.
    hp = ((h + sublane - 1) // sublane) * sublane
    th = pick_from(hp)
    if th is None:
        th = sublane
    return hp, th


# ---------------------------------------------------------------------------
# Wrapper
# ---------------------------------------------------------------------------
def temporal_loss(x, f_x1, cm, *, tile_h=None, target_block_bytes=None):
    """Pallas TPU implementation of TemporalLoss.forward. Returns a scalar (f32)."""
    assert x.shape == f_x1.shape
    n, c, h, w = x.shape
    assert cm.shape == (n, h, w)
    assert c >= 3

    in_itemsize = jnp.dtype(x.dtype).itemsize
    cm_itemsize = jnp.dtype(cm.dtype).itemsize
    # sublane alignment requirement (8 for 32-bit, 16 for bf16/fp16, 32 for int8/fp8)
    sublane = max(8 * max(1, 4 // in_itemsize), 8 * max(1, 4 // cm_itemsize))

    # Generation-aware budgets.
    vmem_cap = _vmem_capacity_bytes()
    vmem_budget = int(0.8 * vmem_cap)
    if target_block_bytes is None:
        # ~6 MiB x-block on 64 MiB-VMEM chips (v7x), ~12 MiB on 128 MiB chips (v5e/v6e).
        target_block_bytes = (6 << 20) if vmem_cap <= (64 << 20) else (12 << 20)

    h_eff = h
    if tile_h is None:
        h_eff, tile_h = _choose_h_tiling(
            n, h, w, in_itemsize, cm_itemsize, sublane,
            target_block_bytes, vmem_budget)
    assert h_eff % tile_h == 0 and (tile_h == h_eff or tile_h % sublane == 0), (tile_h, h_eff)

    # Zero-pad H only if the tiler had to (padded rows contribute 0 since cm pad = 0).
    if h_eff != h:
        pad_h = h_eff - h
        x = jnp.pad(x, ((0, 0), (0, 0), (0, pad_h), (0, 0)))
        f_x1 = jnp.pad(f_x1, ((0, 0), (0, 0), (0, pad_h), (0, 0)))
        cm = jnp.pad(cm, ((0, 0), (0, pad_h), (0, 0)))

    num_h_tiles = h_eff // tile_h

    # VMEM budget including in-kernel f32 temporaries, clamped to physical capacity.
    working_set = _working_set_bytes(tile_h, w, in_itemsize, cm_itemsize)
    vmem_limit = int(min(vmem_budget, max(32 << 20, working_set + (4 << 20))))

    # Advisory cost estimate: ~12 flops/pixel, only the 3 used channels of x / f_x1
    # plus cm are read, a tiny partial-sum output is written per step.
    flops = 12 * n * h_eff * w
    bytes_accessed = (n * h_eff * w * (6 * in_itemsize + cm_itemsize)
                      + n * num_h_tiles * 4)

    partials = pl.pallas_call(
        _temporal_loss_kernel,
        out_shape=jax.ShapeDtypeStruct((n, num_h_tiles, 1, 1), jnp.float32),
        grid_spec=pltpu.PrefetchScalarGridSpec(
            num_scalar_prefetch=0,
            grid=(n, num_h_tiles),
            in_specs=[
                # Only channels 0..2 participate -> channel block dim 3, block index 0.
                pl.BlockSpec((1, 3, tile_h, w), lambda i, j: (i, 0, j, 0)),
                pl.BlockSpec((1, 3, tile_h, w), lambda i, j: (i, 0, j, 0)),
                pl.BlockSpec((1, tile_h, w), lambda i, j: (i, j, 0)),
            ],
            out_specs=pl.BlockSpec((1, 1, 1, 1), lambda i, j: (i, j, 0, 0)),
        ),
        compiler_params=pltpu.CompilerParams(
            dimension_semantics=("parallel", "parallel"),
            vmem_limit_bytes=vmem_limit,
        ),
        cost_estimate=pl.CostEstimate(
            flops=flops, transcendentals=0, bytes_accessed=bytes_accessed),
    )(x, f_x1, cm)

    # Normalize by the ORIGINAL H*W (padding contributes 0 to the sum).
    return jnp.sum(partials) / jnp.float32(h * w)


# ---------------------------------------------------------------------------
# Plain-JAX reference (matches the PyTorch forward, computed in f32)
# ---------------------------------------------------------------------------
def _temporal_loss_ref(x, f_x1, cm):
    _, _, h, w = x.shape
    x = x.astype(jnp.float32)
    f_x1 = f_x1.astype(jnp.float32)
    cm = cm.astype(jnp.float32)
    power_sub = (x - f_x1) ** 2
    return jnp.sum(
        cm * power_sub[:, 0, :, :]
        + cm * power_sub[:, 1, :, :]
        + cm * power_sub[:, 2, :, :]
    ) / (w * h)


if __name__ == "__main__":
    key = jax.random.PRNGKey(0)
    k1, k2, k3, k4, k5, k6, k7, k8, k9 = jax.random.split(key, 9)

    # Case 1: f32 inputs, C=4 > 3 (exercises "only DMA channels 0..2" BlockSpec;
    # small image -> whole-image single block per batch).
    N, C, H, W = 2, 4, 16, 16
    x = jax.random.normal(k1, (N, C, H, W), dtype=jnp.float32)
    f_x1 = jax.random.normal(k2, (N, C, H, W), dtype=jnp.float32)
    cm = jax.random.uniform(k3, (N, H, W), dtype=jnp.float32)

    loss = jax.block_until_ready(temporal_loss(x, f_x1, cm))
    ref = _temporal_loss_ref(x, f_x1, cm)
    assert jnp.allclose(loss, ref, rtol=1e-5, atol=1e-5), (loss, ref)

    # Case 2: bf16 inputs + forced H tiling (multi-tile partial-sum path and
    # in-kernel upcast; no wrapper-side f32 copy of the inputs is made).
    N2, C2, H2, W2 = 2, 3, 32, 128
    xb = jax.random.normal(k4, (N2, C2, H2, W2), dtype=jnp.bfloat16)
    fb = jax.random.normal(k5, (N2, C2, H2, W2), dtype=jnp.bfloat16)
    cmb = jax.random.uniform(k6, (N2, H2, W2), dtype=jnp.float32)

    loss2 = jax.block_until_ready(temporal_loss(xb, fb, cmb, tile_h=16))
    ref2 = _temporal_loss_ref(xb, fb, cmb)
    assert jnp.allclose(loss2, ref2, rtol=1e-3, atol=1e-3), (loss2, ref2)

    # Case 3: non-sublane-aligned H (auto tiler picks tile_h == H since the
    # working set fits VMEM; full-extent block dims are exempt from (8,128)).
    N3, C3, H3, W3 = 1, 3, 13, 128
    xc = jax.random.normal(k7, (N3, C3, H3, W3), dtype=jnp.float32)
    fc = jax.random.normal(k8, (N3, C3, H3, W3), dtype=jnp.float32)
    cmc = jax.random.uniform(k9, (N3, H3, W3), dtype=jnp.float32)

    loss3 = jax.block_until_ready(temporal_loss(xc, fc, cmc))
    ref3 = _temporal_loss_ref(xc, fc, cmc)
    assert jnp.allclose(loss3, ref3, rtol=1e-5, atol=1e-5), (loss3, ref3)

    print("KERNEL_OK")
</pallas_src>

<mosaic_0001>
module attributes {stable_mosaic.version = 11 : i64} {
  func.func @_temporal_loss_kernel(%arg0: i32, %arg1: i32, %arg2: memref<1x3x16x16xf32, #tpu.memory_space<vmem>>, %arg3: memref<1x3x16x16xf32, #tpu.memory_space<vmem>>, %arg4: memref<1x16x16xf32, #tpu.memory_space<vmem>>, %arg5: memref<1x1x1x1xf32, #tpu.memory_space<vmem>>) attributes {dimension_semantics = [#tpu.dimension_semantics<parallel>, #tpu.dimension_semantics<parallel>], iteration_bounds = array<i64: 2, 1>, scalar_prefetch = 0 : i64, scratch_operands = 0 : i64, tpu.core_type = #tpu.core_type<tc>, window_params = [{transform_indices = @transform_0, window_bounds = array<i64: 1, 3, 16, 16>}, {transform_indices = @transform_1, window_bounds = array<i64: 1, 3, 16, 16>}, {transform_indices = @transform_2, window_bounds = array<i64: 1, 16, 16>}, {transform_indices = @transform_3, window_bounds = array<i64: 1, 1, 1, 1>}]} {
    %c0 = arith.constant 0 : index
    %c0_0 = arith.constant 0 : index
    %c0_1 = arith.constant 0 : index
    %0 = vector.load %arg4[%c0, %c0_0, %c0_1] : memref<1x16x16xf32, #tpu.memory_space<vmem>>, vector<1x16x16xf32>
    %1 = vector.shape_cast %0 : vector<1x16x16xf32> to vector<16x16xf32>
    %c0_2 = arith.constant 0 : index
    %c0_3 = arith.constant 0 : index
    %c0_4 = arith.constant 0 : index
    %c0_5 = arith.constant 0 : index
    %2 = vector.load %arg2[%c0_2, %c0_3, %c0_4, %c0_5] : memref<1x3x16x16xf32, #tpu.memory_space<vmem>>, vector<1x1x16x16xf32>
    %3 = vector.shape_cast %2 : vector<1x1x16x16xf32> to vector<16x16xf32>
    %c0_6 = arith.constant 0 : index
    %c0_7 = arith.constant 0 : index
    %c0_8 = arith.constant 0 : index
    %c0_9 = arith.constant 0 : index
    %4 = vector.load %arg3[%c0_6, %c0_7, %c0_8, %c0_9] : memref<1x3x16x16xf32, #tpu.memory_space<vmem>>, vector<1x1x16x16xf32>
    %5 = vector.shape_cast %4 : vector<1x1x16x16xf32> to vector<16x16xf32>
    %6 = arith.subf %3, %5 : vector<16x16xf32>
    %7 = arith.mulf %6, %6 : vector<16x16xf32>
    %8 = arith.mulf %1, %7 : vector<16x16xf32>
    %9 = vector.shape_cast %8 : vector<16x16xf32> to vector<1x16x16xf32>
    %cst = arith.constant dense<0.000000e+00> : vector<1xf32>
    %10 = vector.multi_reduction <add>, %9, %cst [1, 2] : vector<1x16x16xf32> to vector<1xf32>
    %11 = vector.shape_cast %10 : vector<1xf32> to vector<1x1x1xf32>
    %12 = vector.extract %11[0, 0, 0] : f32 from vector<1x1x1xf32>
    %cst_10 = arith.constant 0.000000e+00 : f32
    %13 = arith.addf %cst_10, %12 : f32
    %c0_11 = arith.constant 0 : index
    %c1 = arith.constant 1 : index
    %c0_12 = arith.constant 0 : index
    %c0_13 = arith.constant 0 : index
    %14 = vector.load %arg2[%c0_11, %c1, %c0_12, %c0_13] : memref<1x3x16x16xf32, #tpu.memory_space<vmem>>, vector<1x1x16x16xf32>
    %15 = vector.shape_cast %14 : vector<1x1x16x16xf32> to vector<16x16xf32>
    %c0_14 = arith.constant 0 : index
    %c1_15 = arith.constant 1 : index
    %c0_16 = arith.constant 0 : index
    %c0_17 = arith.constant 0 : index
    %16 = vector.load %arg3[%c0_14, %c1_15, %c0_16, %c0_17] : memref<1x3x16x16xf32, #tpu.memory_space<vmem>>, vector<1x1x16x16xf32>
    %17 = vector.shape_cast %16 : vector<1x1x16x16xf32> to vector<16x16xf32>
    %18 = arith.subf %15, %17 : vector<16x16xf32>
    %19 = arith.mulf %18, %18 : vector<16x16xf32>
    %20 = arith.mulf %1, %19 : vector<16x16xf32>
    %21 = vector.shape_cast %20 : vector<16x16xf32> to vector<1x16x16xf32>
    %cst_18 = arith.constant dense<0.000000e+00> : vector<1xf32>
    %22 = vector.multi_reduction <add>, %21, %cst_18 [1, 2] : vector<1x16x16xf32> to vector<1xf32>
    %23 = vector.shape_cast %22 : vector<1xf32> to vector<1x1x1xf32>
    %24 = vector.extract %23[0, 0, 0] : f32 from vector<1x1x1xf32>
    %25 = arith.addf %13, %24 : f32
    %c0_19 = arith.constant 0 : index
    %c2 = arith.constant 2 : index
    %c0_20 = arith.constant 0 : index
    %c0_21 = arith.constant 0 : index
    %26 = vector.load %arg2[%c0_19, %c2, %c0_20, %c0_21] : memref<1x3x16x16xf32, #tpu.memory_space<vmem>>, vector<1x1x16x16xf32>
    %27 = vector.shape_cast %26 : vector<1x1x16x16xf32> to vector<16x16xf32>
    %c0_22 = arith.constant 0 : index
    %c2_23 = arith.constant 2 : index
    %c0_24 = arith.constant 0 : index
    %c0_25 = arith.constant 0 : index
    %28 = vector.load %arg3[%c0_22, %c2_23, %c0_24, %c0_25] : memref<1x3x16x16xf32, #tpu.memory_space<vmem>>, vector<1x1x16x16xf32>
    %29 = vector.shape_cast %28 : vector<1x1x16x16xf32> to vector<16x16xf32>
    %30 = arith.subf %27, %29 : vector<16x16xf32>
    %31 = arith.mulf %30, %30 : vector<16x16xf32>
    %32 = arith.mulf %1, %31 : vector<16x16xf32>
    %33 = vector.shape_cast %32 : vector<16x16xf32> to vector<1x16x16xf32>
    %cst_26 = arith.constant dense<0.000000e+00> : vector<1xf32>
    %34 = vector.multi_reduction <add>, %33, %cst_26 [1, 2] : vector<1x16x16xf32> to vector<1xf32>
    %35 = vector.shape_cast %34 : vector<1xf32> to vector<1x1x1xf32>
    %36 = vector.extract %35[0, 0, 0] : f32 from vector<1x1x1xf32>
    %37 = arith.addf %25, %36 : f32
    %38 = vector.broadcast %37 : f32 to vector<1x1x1x1xf32>
    %c0_27 = arith.constant 0 : index
    %c0_28 = arith.constant 0 : index
    %c0_29 = arith.constant 0 : index
    %c0_30 = arith.constant 0 : index
    %39 = vector.load %arg5[%c0_27, %c0_28, %c0_29, %c0_30] : memref<1x1x1x1xf32, #tpu.memory_space<vmem>>, vector<1x1x1x1xf32>
    tpu.vector_store %arg5[%c0_27, %c0_28, %c0_29, %c0_30], %38 {strides = array<i32>} : memref<1x1x1x1xf32, #tpu.memory_space<vmem>>, vector<1x1x1x1xf32>,
    return
  }
  func.func @transform_0(%arg0: i32, %arg1: i32) -> (i32, i32, i32, i32) {
    %c0_i32 = arith.constant 0 : i32
    %c0_i32_0 = arith.constant 0 : i32
    %c0_i32_1 = arith.constant 0 : i32
    return %arg0, %c0_i32, %arg1, %c0_i32_0 : i32, i32, i32, i32
  }
  func.func @transform_1(%arg0: i32, %arg1: i32) -> (i32, i32, i32, i32) {
    %c0_i32 = arith.constant 0 : i32
    %c0_i32_0 = arith.constant 0 : i32
    %c0_i32_1 = arith.constant 0 : i32
    return %arg0, %c0_i32, %arg1, %c0_i32_0 : i32, i32, i32, i32
  }
  func.func @transform_2(%arg0: i32, %arg1: i32) -> (i32, i32, i32) {
    %c0_i32 = arith.constant 0 : i32
    %c0_i32_0 = arith.constant 0 : i32
    return %arg0, %arg1, %c0_i32 : i32, i32, i32
  }
  func.func @transform_3(%arg0: i32, %arg1: i32) -> (i32, i32, i32, i32) {
    %c0_i32 = arith.constant 0 : i32
    %c0_i32_0 = arith.constant 0 : i32
    %c0_i32_1 = arith.constant 0 : i32
    return %arg0, %arg1, %c0_i32, %c0_i32_0 : i32, i32, i32, i32
  }
}

</mosaic_0001>

<bundles_post_ra>
// kernel: tpu_custom_call.1
= control target key start
LH: loop header
LB: loop body
LE: loop exit
PB: predicated region body
PF: predicated region fallthrough
CT: control target
= control target key end

     0   :  { %8 = vsyncpa [#allocation3], 0  ;;  %s1007_s0 = inlined_call_operand.hbm [shape: f32[2,4,16,16], index: 0, kind: input, shape index: {}]   ;;  %s1008_s1 = inlined_call_operand.hbm [shape: f32[2,4,16,16], index: 1, kind: input, shape index: {}]   ;;  %s1009_s2 = inlined_call_operand.hbm [shape: f32[2,16,16], index: 2, kind: input, shape index: {}]   ;;  %s1010_s3 = inlined_call_operand.vmem [shape: f32[2,1,1,1], index: 3, kind: output, shape index: {}]  }
   0x1   :  { %10 = vsyncpa [#allocation3 + $0x1], 0 }
   0x2   :  { %11 = vsyncpa [#allocation5], 0 }
   0x3   :  { %13 = vsyncpa [#allocation5 + $0x1], 0  ;;  %s780_s12 = smov 0   ;;  %s782_s13 = smov 0  }
   0x4   :  { %s784_s14 = smov 0   ;;  %s786_s15 = smov 0  }
   0x5   :  { %s788_s16 = smov 0   ;;  %s790_s17 = smov 0  }
   0x6 LB: > { %s1012_s18 = sadd.s32 4294967295, %s753_s17   ;;  %s31_s19 = sadd.s32 1, %s749_s16  ;;  %s753_s17 = sphi %s790_s17, %s19_s17   ;;  %s749_s16 = sphi %s788_s16, %s1025_s16   ;;  %s745_s15 = sphi %s786_s15, %s1024_s15   ;;  %s741_s14 = sphi %s784_s14, %s1023_s14   ;;  %s737_s13 = sphi %s782_s13, %s1022_s13   ;;  %s733_s12 = sphi %s780_s12, %s1021_s12  }
   0x7   : > { %p33_p0 = scmp.ge.s32.totalorder %s31_s19, 2  ;;  %s40_s20 = sadd.s32 1, %s741_s14 }
   0x8   : > { %p47_p1 = scmp.ne.s32.totalorder %s741_s14, %s737_s13  ;;  %p48_p2 = scmp.eq.s32.totalorder %s753_s17, 0 }
   0x9   : > { %s1027_s19 = smov (%p33_p0, %s31_s19), 0  ;;  %p53_p4 = scmp.ne.s32.totalorder %s737_s13, %s733_s12 }
   0xa   : > { %p49_p3 = por %p48_p2, %p47_p1  ;;  %s35_s21 = ssub.s32 %s749_s16, %s1027_s19 }
   0xb   : > { %p54_p5 = scmp.eq.s32.totalorder %s1012_s18, 0  ;;  %p38_p6 = scmp.eq.s32.totalorder %s35_s21, 0 }
   0xc   : > { %p558_p8 = scmp.lt.s32.totalorder %s753_s17, 2  ;;  %s830_s24 = sand.u32 1, %s741_s14  }
   0xd   : > { %p821_p7 = por %p54_p5, %p53_p4  ;;  %s530_s25 = sshll.u32 %s749_s16, 10 }
   0xe   : > { %s827_s23 = scalar_select %p38_p6, %s741_s14, %s40_s20  }
   0xf   : > { %s1013_s22 = scalar_select %p821_p7, 1, 0 }
  0x10   : > { %s533_s26 = smul.u32 48, %s830_s24  ;;  %p834_p9 = pnand %p558_p8, %p49_p3 }
  0x11   : > { %s184_s28 = sand.u32 1, %s753_s17   ;;  %s844_s4 = scalar_lea.hbm %s1008_s1, %s530_s25 }
  0x12   : > { %s188_s5 = scalar_lea.vmem [#allocation4], %s533_s26  ;;  %s851_s7 = scalar_lea.sflag [#allocation5], %s184_s28 }
  0x13   : > { %s197_s6 = sshll.u32 %s188_s5, 4  ;;  %s609_s8 = scalar_lea.hbm %s844_s4, 768  ;;  %s848_s6 = int_to_ptr.vmem [resolvable:$true] %s197_s6 }
  0x14   : > { %p610_p11 = scmp.ne.s32.totalorder %s844_s4, %s609_s8  ;;  %p857_p12 = pneg %p834_p9 }
  0x15   : > { %s614_s12 = scalar_lea.hbm %s1008_s1, 2048  ;;  %p615_p1 = scmp.lt.u32.totalorder %s844_s4, %s1008_s1 }
  0x16   : > { %p612_p13 = pnand %p857_p12, %p610_p11  ;;  %p616_p2 = scmp.lt.u32.totalorder %s614_s12, %s609_s8 }
  0x17   : > { %p618_p4 = scmp.lt.u32.totalorder %s609_s8, %s844_s4 }
  0x18   : > { %p613_p0 = pneg %p612_p13  ;;  %p617_p3 = por %p616_p2, %p615_p1 }
  0x1a   : > { %p619_p5 = por %p618_p4, %p617_p3 }
  0x1c   : > { %p620_p6 = pnand %p619_p5, %p613_p0 }
  0x1e   : > { %623 = shalt.err (!%p620_p6)
}
  0x1f   : > { %s624_s28 = scalar_lea.vmem %s848_s6, 768  ;;  %s755_s29 = smov [#allocation4]  }
  0x20   : > { %p625_p8 = scmp.ne.s32.totalorder %s848_s6, %s624_s28  ;;  %s629_s30 = sshll.u32 %s755_s29, 4  ;;  %s630_s30 = int_to_ptr.vmem [resolvable:$false] %s629_s30 }
  0x21   : > { %s631_s5 = scalar_lea.vmem %s630_s30, 1536  ;;  %p632_p10 = scmp.lt.s32.totalorder %s848_s6, %s630_s30 }
  0x22   : > { %p627_p11 = pnand %p625_p8, %p857_p12  ;;  %p633_p7 = scmp.lt.s32.totalorder %s631_s5, %s624_s28 }
  0x24   : > { %p628_p13 = pneg %p627_p11  ;;  %p634_p1 = por %p633_p7, %p632_p10 }
  0x26   : > { %p635_p2 = pnand %p634_p1, %p628_p13 }
  0x28   : > { %638 = shalt.err (!%p635_p2)
}
  0x29   : > { %s756_s8 = smov 128   ;;  %s757_s10 = smov 8  }
  0x2a   : > { %554 = dma.hbm_to_vmem [thread:$0]  (!%p834_p9), %s844_s4, 768, %s848_s6, %s851_s7, %s756_s8, %s756_s8, %s757_s10  }
  0x2b   : > { %p228_p7 = scmp.lt.s32.totalorder %s753_s17, 3  ;;  %p1016_p10 = scmp.ge.s32.totalorder %s753_s17, 1 }
  0x2c   : > { %s896_s21 = scalar_lea.hbm %s1007_s0, %s530_s25  ;;  %s165_s28 = scalar_lea.vmem [#allocation2], %s533_s26 }
  0x2d   : > { %p887_p0 = pnand %p1016_p10, %p228_p7  ;;  %s174_s29 = sshll.u32 %s165_s28, 4  ;;  %s900_s29 = int_to_ptr.vmem [resolvable:$true] %s174_s29 }
  0x2e   : > { %s515_s4 = sshll.u32 %s830_s24, 4  ;;  %s162_s6 = scalar_lea.sflag [#allocation3], %s830_s24 }
  0x2f   : > { %s1017_s11 = scalar_select %p887_p0, 1, 0 }
  0x30   : > { %s639_s30 = scalar_lea.hbm %s896_s21, 768  ;;  %s644_s25 = scalar_lea.hbm %s1007_s0, 2048 }
  0x31   : > { %p640_p3 = scmp.ne.s32.totalorder %s896_s21, %s639_s30  ;;  %p645_p6 = scmp.lt.u32.totalorder %s896_s21, %s1007_s0 }
  0x32   : > { %p646_p8 = scmp.lt.u32.totalorder %s644_s25, %s639_s30  ;;  %p648_p13 = scmp.lt.u32.totalorder %s639_s30, %s896_s21 }
  0x33   : > { %p642_p4 = pnand %p640_p3, %p857_p12 }
  0x34   : > { %p647_p11 = por %p646_p8, %p645_p6 }
  0x35   : > { %p643_p5 = pneg %p642_p4 }
  0x36   : > { %p649_p1 = por %p648_p13, %p647_p11 }
  0x38   : > { %p650_p2 = pnand %p649_p1, %p643_p5 }
  0x3a   : > { %653 = shalt.err (!%p650_p2)
}
  0x3b   : > { %s654_s26 = scalar_lea.vmem %s900_s29, 768  ;;  %s758_s28 = smov [#allocation2]  }
  0x3c   : > { %p655_p7 = scmp.ne.s32.totalorder %s900_s29, %s654_s26  ;;  %s659_s5 = sshll.u32 %s758_s28, 4  ;;  %s660_s5 = int_to_ptr.vmem [resolvable:$false] %s659_s5 }
  0x3d   : > { %s661_s18 = scalar_lea.vmem %s660_s5, 1536  ;;  %p662_p4 = scmp.lt.s32.totalorder %s900_s29, %s660_s5 }
  0x3e   : > { %p657_p10 = pnand %p655_p7, %p857_p12  ;;  %p663_p0 = scmp.lt.s32.totalorder %s661_s18, %s654_s26 }
  0x40   : > { %p658_p3 = pneg %p657_p10  ;;  %p664_p6 = por %p663_p0, %p662_p4 }
  0x42   : > { %p665_p8 = pnand %p664_p6, %p658_p3 }
  0x44   : > { %668 = shalt.err (!%p665_p8)
}
  0x45   : > { %551 = dma.hbm_to_vmem [thread:$0]  (!%p834_p9), %s896_s21, 768, %s900_s29, %s162_s6, %s756_s8, %s756_s8, %s757_s10  }
  0x46   : > { %s532_s30 = sshll.u32 %s749_s16, 8  ;;  %s211_s26 = scalar_lea.vmem [#allocation6], %s515_s4 }
  0x47   : > { %s934_s20 = scalar_lea.hbm %s1009_s2, %s532_s30  ;;  %s220_s28 = sshll.u32 %s211_s26, 4  ;;  %s938_s28 = int_to_ptr.vmem [resolvable:$true] %s220_s28 }
  0x48   : > { %s669_s5 = scalar_lea.hbm %s934_s20, 256  ;;  %s674_s6 = scalar_lea.hbm %s1009_s2, 512 }
  0x49   : > { %p670_p0 = scmp.ne.s32.totalorder %s934_s20, %s669_s5  ;;  %p675_p13 = scmp.lt.u32.totalorder %s934_s20, %s1009_s2 }
  0x4a   : > { %p676_p1 = scmp.lt.u32.totalorder %s674_s6, %s669_s5  ;;  %p678_p7 = scmp.lt.u32.totalorder %s669_s5, %s934_s20 }
  0x4b   : > { %p672_p5 = pnand %p670_p0, %p857_p12 }
  0x4c   : > { %p677_p2 = por %p676_p1, %p675_p13 }
  0x4d   : > { %p673_p11 = pneg %p672_p5 }
  0x4e   : > { %p679_p10 = por %p678_p7, %p677_p2 }
  0x50   : > { %p680_p3 = pnand %p679_p10, %p673_p11 }
  0x52   : > { %683 = shalt.err (!%p680_p3)
}
  0x53   : > { %s684_s24 = scalar_lea.vmem %s938_s28, 256  ;;  %s759_s4 = smov [#allocation6]  }
  0x54   : > { %p685_p4 = scmp.ne.s32.totalorder %s938_s28, %s684_s24  ;;  %s689_s12 = sshll.u32 %s759_s4, 4  ;;  %s690_s12 = int_to_ptr.vmem [resolvable:$false] %s689_s12 }
  0x55   : > { %s691_s25 = scalar_lea.vmem %s690_s12, 512  ;;  %p692_p0 = scmp.lt.s32.totalorder %s938_s28, %s690_s12 }
  0x56   : > { %p687_p6 = pnand %p685_p4, %p857_p12  ;;  %p693_p5 = scmp.lt.s32.totalorder %s691_s25, %s684_s24 }
  0x58   : > { %p688_p8 = pneg %p687_p6  ;;  %p694_p13 = por %p693_p5, %p692_p0 }
  0x5a   : > { %p695_p1 = pnand %p694_p13, %p688_p8 }
  0x5c   : > { %698 = shalt.err (!%p695_p1)
}
  0x5d   : > { %557 = dma.hbm_to_vmem [thread:$0]  (!%p834_p9), %s934_s20, 256, %s938_s28, %s851_s7, %s756_s8, %s756_s8, %s757_s10  }
  0x5e   : > { %p1018_p12 = scmp.ne.s32.totalorder %s1017_s11, 0 }
  0x5f   : > { %s234_s9 = sand.u32 (!%p1018_p12), 1, %s737_s13   ;;  %p1019_p11 = scmp.ne.s32.totalorder (!%p1018_p12), %s1013_s22, 0 }
  0x60   : > { %232 = sbr.rel (%p1018_p12) target bundleno = 336 (0x150), region = 32  ;;  %s235_s5 = scalar_lea.sflag (!%p1018_p12), [#allocation3], %s234_s9 }
  0x61   : > { %s535_s26 = smul.u32 (!%p1018_p12), 48, %s234_s9 }
  0x63   : > { %s238_s21 = scalar_lea.vmem (!%p1018_p12), [#allocation2], %s535_s26 }
  0x67   : > { %724 = dma.done.wait (%p1019_p11), %s235_s5, 768  }
  0x68   : > { %726 = vsyncadd (%p1019_p11), %s235_s5, 4294966528  ;;  %s1020_s27 = sadd.s32 4294967295, %s753_s17   ;;  %s247_s7 = scalar_lea.vmem [#allocation4], %s535_s26 }
  0x69   : > { %s243_s29 = sand.u32 1, %s1020_s27  }
  0x6a   : > { %s244_s6 = scalar_lea.sflag [#allocation5], %s243_s29 }
  0x6b   : > { %728 = dma.done.wait (%p1019_p11), %s244_s6, 1024  }
  0x6c   : > { %730 = vsyncadd (%p1019_p11), %s244_s6, 4294966272  ;;  %s519_s8 = sshll.u32 %s234_s9, 4  ;;  %v524_v0 = vld [vmem:[%s238_s21 + $0x20] sm:$0xff]  ;;  %v525_v3 = vld [vmem:[%s238_s21 + $0x28] sm:$0xff]  ;;  %vm311_vm0 = vcmask 130048   ;;  %p293_p9 = scmp.lt.s32.totalorder %s745_s15, 1 }
  0x6d   : > { %s256_s10 = scalar_lea.vmem [#allocation6], %s519_s8  ;;  %v526_v4 = vld [vmem:[%s247_s7 + $0x20] sm:$0xff]  ;;  %v527_v5 = vld [vmem:[%s247_s7 + $0x28] sm:$0xff]  ;;  %v520_v13 = vld [vmem:[%s238_s21 + $0x10] sm:$0xff]  ;;  %vm376_vm1 = vcmask 0  }
  0x6e   : > { %v299_v1 = vld [vmem:[%s256_s10] sm:$0xff]  ;;  %v300_v2 = vld [vmem:[%s256_s10 + $0x8] sm:$0xff]  ;;  %v356_v6 = vsub.f32 %v524_v0, %v526_v4  ;;  %v357_v7 = vsub.f32 %v525_v3, %v527_v5  ;;  %v521_v14 = vld [vmem:[%s238_s21 + $0x18] sm:$0xff]  ;;  %s1029_s15 = smov (!%p293_p9, %s745_s15), 1 }
  0x6f   : > { %v301_v8 = vld [vmem:[%s238_s21] sm:$0xff]  ;;  %v302_v9 = vld [vmem:[%s238_s21 + $0x8] sm:$0xff]  ;;  %v522_v18 = vld [vmem:[%s247_s7 + $0x10] sm:$0xff]  ;;  %s298_s24 = scalar_lea.vmem %s1010_s3, %s1029_s15 }
  0x70   : > { %v303_v10 = vld [vmem:[%s247_s7] sm:$0xff]  ;;  %v304_v11 = vld [vmem:[%s247_s7 + $0x8] sm:$0xff]  ;;  %v358_v15 = vmul.f32 %v356_v6, %v356_v6  ;;  %v359_v16 = vmul.f32 %v357_v7, %v357_v7  ;;  %v523_v19 = vld [vmem:[%s247_s7 + $0x18] sm:$0xff]  ;;  %v331_v21 = vsub.f32 %v520_v13, %v522_v18 }
  0x71   : > { %v305_v12 = vsub.f32 %v301_v8, %v303_v10  ;;  %v306_v17 = vsub.f32 %v302_v9, %v304_v11  ;;  %v332_v22 = vsub.f32 %v521_v14, %v523_v19 }
  0x72   : > { %v360_v23 = vmul.f32 %v358_v15, %v299_v1  ;;  %v361_v24 = vmul.f32 %v359_v16, %v300_v2  ;;  %v333_v27 = vmul.f32 %v331_v21, %v331_v21 }
  0x73   : > { %v307_v20 = vmul.f32 %v305_v12, %v305_v12  ;;  %v308_v25 = vmul.f32 %v306_v17, %v306_v17  ;;  %v334_v28 = vmul.f32 %v332_v22, %v332_v22 }
  0x74   : > { %v362_v29 = vsel %vm311_vm0, %v360_v23, 0.0  ;;  %v363_v30 = vsel %vm311_vm0, %v361_v24, 0.0  ;;  %v335_v34 = vmul.f32 %v333_v27, %v299_v1 }
  0x75   : > { %v309_v26 = vmul.f32 %v307_v20, %v299_v1  ;;  %v310_v31 = vmul.f32 %v308_v25, %v300_v2  ;;  %v364_v32 = vadd.f32 %v363_v30, %v362_v29  ;;  %v336_v35 = vmul.f32 %v334_v28, %v300_v2 }
  0x76   : > { %v337_v38 = vsel %vm311_vm0, %v335_v34, 0.0 }
  0x77   : > { %v312_v33 = vsel %vm311_vm0, %v309_v26, 0.0  ;;  %v313_v36 = vsel %vm311_vm0, %v310_v31, 0.0  ;;  %365 = vadd.xlane.f32.xlu1 %v364_v32  ;;  %v338_v39 = vsel %vm311_vm0, %v336_v35, 0.0 }
  0x78   : > { %v314_v37 = vadd.f32 %v313_v36, %v312_v33  ;;  %v339_v40 = vadd.f32 %v338_v39, %v337_v38 }
  0x7a   : > { %315 = vadd.xlane.f32.xlu0 %v314_v37 }
  0x7e   : > { %340 = vadd.xlane.f32.xlu0 %v339_v40 }
 0x104   : > { %v366_v41 = vpop.xlane.xlu1 %365 }
 0x105   : > { %v367_v42 = vrot.slane %v366_v41, 4 }
 0x107   : > { %v316_v43 = vpop.xlane.xlu0 %315  ;;  %v368_v44 = vadd.f32 %v367_v42, %v366_v41 }
 0x108   : > { %v317_v45 = vrot.slane %v316_v43, 4 }
 0x109   : > { %v369_v47 = vrot.slane %v368_v44, 2 }
 0x10a   : > { %v318_v46 = vadd.f32 %v317_v45, %v316_v43 }
 0x10b   : > { %v341_v48 = vpop.xlane.xlu0 %340  ;;  %v370_v53 = vadd.f32 %v369_v47, %v368_v44 }
 0x10c   : > { %v319_v49 = vrot.slane %v318_v46, 2  ;;  %v342_v50 = vrot.slane %v341_v48, 4 }
 0x10d   : > { %v371_v58 = vrot.slane %v370_v53, 1 }
 0x10e   : > { %v343_v51 = vadd.f32 %v342_v50, %v341_v48  ;;  %v320_v52 = vadd.f32 %v319_v49, %v318_v46 }
 0x10f   : > { %v372_v61 = vadd.f32 %v371_v58, %v370_v53 }
 0x110   : > { %v344_v54 = vrot.slane %v343_v51, 2  ;;  %v321_v55 = vrot.slane %v320_v52, 1 }
 0x112   : > { %v345_v56 = vadd.f32 %v344_v54, %v343_v51  ;;  %v322_v57 = vadd.f32 %v321_v55, %v320_v52 }
 0x114   : > { %536 = vpush %v322_v57  ;;  %v346_v59 = vrot.slane %v345_v56, 1 }
 0x116   : > { %v347_v60 = vadd.f32 %v346_v59, %v345_v56 }
 0x118   : > { %538 = vpush %v347_v60 }
 0x119   : > { %540 = vpush %v372_v61 }
 0x145   : > { %s537_s22 = spop %536 }
 0x149   : > { %s539_s11 = spop %538 }
 0x14a   : > { %s349_s20 = sadd.f32 %s539_s11, %s537_s22  ;;  %s541_s28 = spop %540 }
 0x14c   : > { %s374_s4 = sadd.f32 %s541_s28, %s349_s20 }
 0x14e   : > { %v375_v62 = vstv %s374_s4 }
 0x14f   : > { %377 = vst.msk [vmem:[%s298_s24] sm:$0x1] %vm376_vm1, %v375_v62 }
 0x150 PF: > { %s19_s17 = sadd.s32 1, %s753_s17   ;;  %s1021_s12 = smov %s737_s13 }
 0x151   : > { %p16_p2 = scmp.ge.s32.totalorder %s19_s17, 4   ;;  %s1022_s13 = smov %s741_s14 }
 0x152   : > { %s1023_s14 = smov %s827_s23  ;;  %s1024_s15 = smov %s749_s16 }
 0x153   : > { %s1025_s16 = smov %s1027_s19  ;;  %18 = sbr.rel (!%p16_p2) target bundleno = 6 (0x6), region = 100 }
 0x15a   :  { %401 = vsyncpa [#allocation3], 1 }
 0x15b   :  { %403 = vsyncpa [#allocation3 + $0x1], 1 }
 0x15c   :  { %404 = vsyncpa [#allocation5], 1 }
 0x15d   :  { %406 = vsyncpa [#allocation5 + $0x1], 1 }

</bundles_post_ra>
